<compile_context>
chip_gen: v7x
topology: tpu7x:2x2x1
jax: 0.10.0
libtpu: 0.0.40
codegen_flags: <defaults>
</compile_context>

<pallas_src>
import functools

import jax
import jax.numpy as jnp
from jax import lax
from jax.experimental import pallas as pl
from jax.experimental.pallas import tpu as pltpu

KSIZE = 3                      # conv kernel size, padding = KSIZE // 2 ("same")
MATMUL_DTYPE = jnp.bfloat16    # MXU input dtype (accumulation stays f32)


def _residual_block_kernel(x_ref, w1_ref, b1_ref, w2_ref, b2_ref,
                           out_ref, xpad_ref, lhs_ref, *, H, B_TILE):
    """One tile of B_TILE batch elements per grid step.

    x_ref    : (B_TILE, H, W*C) f32        lane-dense packed input (NHWC flat)
    w*_ref   : (3*W*C, W*C)     bf16       dy-stacked, x-clipped banded weights
    b*_ref   : (1, W*C)         f32        per-channel bias tiled across W
    out_ref  : (B_TILE, H, W*C)
    xpad_ref : (B_TILE*(H+2), W*C) bf16    stacked images + zero halo rows
    lhs_ref  : (B_TILE*(H+2)-2, 3*W*C) bf16 K-concatenated matmul LHS staging
    """
    _, _, WC = x_ref.shape
    Hp = H + 2                       # rows per stacked element in the scratch
    R = B_TILE * Hp - 2              # matmul M (rows per conv)

    # Re-zero the 2 halo rows of every stacked element each step (keeps the
    # grid axis megacore-safe "parallel"; ~B_TILE KiB of bf16 stores).
    zrow = jnp.zeros((1, WC), xpad_ref.dtype)
    for b in range(B_TILE):
        xpad_ref[b * Hp:b * Hp + 1, :] = zrow
        xpad_ref[b * Hp + H + 1:b * Hp + H + 2, :] = zrow

    # Interior stores: f32 -> bf16 cast happens exactly once, here.
    for b in range(B_TILE):
        xpad_ref[b * Hp + 1:b * Hp + 1 + H, :] = x_ref[b].astype(xpad_ref.dtype)

    def conv3x3(w_ref, b_ref):
        # LHS row r = [xpad[r] | xpad[r+1] | xpad[r+2]]  ->  one K=3*W*C matmul.
        # The sublane-offset reads (dy = 1, 2) are paid once per conv here;
        # all lhs_ref stores are lane-aligned (offsets 0, W*C, 2*W*C).
        for dy in range(KSIZE):
            lhs_ref[:, dy * WC:(dy + 1) * WC] = xpad_ref[dy:dy + R, :]
        return jnp.dot(lhs_ref[...], w_ref[...],
                       preferred_element_type=jnp.float32) + b_ref[...]

    # conv1 + ReLU (f32 elementwise).
    h = jnp.maximum(conv3x3(w1_ref, b1_ref), 0.0)
    if B_TILE > 1:
        # Rows that land on separator/halo positions are junk; zero them so
        # the store below keeps the scratch halo rows zero for conv2.
        r_idx = lax.broadcasted_iota(jnp.int32, (R, 1), 0)
        h = jnp.where((r_idx % Hp) < H, h, 0.0)
    xpad_ref[1:1 + R, :] = h.astype(xpad_ref.dtype)

    # conv2 + residual add (f32, reads the untouched f32 x_ref block).
    y = conv3x3(w2_ref, b2_ref)
    for b in range(B_TILE):
        out_ref[b] = (y[b * Hp:b * Hp + H] + x_ref[b]).astype(out_ref.dtype)


def _banded_weights(w_hwio, W):
    """(3,3,Cin,Cout) HWIO -> (3*W*Cin, W*Cout) dy-stacked banded matrix.

    Wb[dy*W*Cin + j*Cin + ci, x*Cout + co] = w[dy, dx, ci, co] with j = x+dx-1;
    taps with j outside [0, W) (i.e. the SAME x-padding) are dropped, so the dx
    taps, the x-padding and the channel contraction of the 3x3 conv all fold
    into a single K = 3*W*Cin matmul on the dy-concatenated row strips.
    """
    _, _, cin, cout = w_hwio.shape
    xs = jnp.arange(W)[:, None, None]            # output x
    js = jnp.arange(W)[None, :, None]            # input  x
    dxs = jnp.arange(KSIZE)[None, None, :]       # dx tap
    sel = (js == xs + dxs - (KSIZE // 2)).astype(w_hwio.dtype)   # (W, W, 3)
    wb = jnp.einsum('xjd,ydio->yjixo', sel, w_hwio)   # (3, W, Cin, W, Cout)
    return wb.reshape(KSIZE * W * cin, W * cout).astype(MATMUL_DTYPE)


def _pick_batch_tile(N, H, target_rows=256):
    """Largest divisor of N whose stacked row count stays <= target_rows.

    target_rows targets an MXU-friendly M (>=128 on v5e, >=256 on v6e/v7x);
    at tiny N this trades grid depth for matmul M (see NOTE at top).
    """
    best = 1
    for b in range(1, N + 1):
        if N % b == 0 and b * (H + 2) <= target_rows:
            best = b
    return best


def _vmem_limit_bytes(B_TILE, H, WC):
    """Scoped-VMEM request derived from the actual block sizes (+ headroom)."""
    f32, bf16 = 4, 2
    io_blocks = 2 * (B_TILE * H * WC * f32)                   # x block + out block
    weights = 2 * (KSIZE * WC * WC * bf16) + 2 * (WC * f32)   # wcat1/2 + bias1/2
    scratch = (B_TILE * (H + 2) * WC
               + (B_TILE * (H + 2) - 2) * KSIZE * WC) * bf16
    need = 2 * (io_blocks + weights) + scratch                # double-buffered I/O
    return int(min(max(4 * need, 8 << 20), 32 << 20))


def residual_block(x_nchw, w1, b1, w2, b2):
    """x_nchw: (N, C, H, W) f32; w*: (3,3,C,C) HWIO; b*: (C,)."""
    N, C, H, W = x_nchw.shape
    WC = W * C
    B_TILE = _pick_batch_tile(N, H)
    R = B_TILE * (H + 2) - 2

    # NCHW -> lane-dense (N, H, W*C) packing (channels innermost).  Under jit
    # the transpose+reshape fuses into a single relayout copy of the input.
    x_pk = jnp.transpose(x_nchw, (0, 2, 3, 1)).reshape(N, H, WC)

    wcat1 = _banded_weights(w1, W)
    wcat2 = _banded_weights(w2, W)
    bt1 = jnp.tile(b1, W).reshape(1, WC).astype(jnp.float32)
    bt2 = jnp.tile(b2, W).reshape(1, WC).astype(jnp.float32)

    out_pk = pl.pallas_call(
        functools.partial(_residual_block_kernel, H=H, B_TILE=B_TILE),
        out_shape=jax.ShapeDtypeStruct((N, H, WC), x_nchw.dtype),
        grid_spec=pltpu.PrefetchScalarGridSpec(
            num_scalar_prefetch=0,
            grid=(N // B_TILE,),
            in_specs=[
                pl.BlockSpec((B_TILE, H, WC), lambda n: (n, 0, 0)),
                pl.BlockSpec((KSIZE * WC, WC), lambda n: (0, 0)),
                pl.BlockSpec((1, WC), lambda n: (0, 0)),
                pl.BlockSpec((KSIZE * WC, WC), lambda n: (0, 0)),
                pl.BlockSpec((1, WC), lambda n: (0, 0)),
            ],
            out_specs=pl.BlockSpec((B_TILE, H, WC), lambda n: (n, 0, 0)),
            scratch_shapes=[
                pltpu.VMEM((B_TILE * (H + 2), WC), MATMUL_DTYPE),
                pltpu.VMEM((R, KSIZE * WC), MATMUL_DTYPE),
            ],
        ),
        compiler_params=pltpu.CompilerParams(
            dimension_semantics=("parallel",),
            vmem_limit_bytes=_vmem_limit_bytes(B_TILE, H, WC)),
    )(x_pk, wcat1, bt1, wcat2, bt2)

    # (N, H, W*C) -> NCHW
    return jnp.transpose(out_pk.reshape(N, H, W, C), (0, 3, 1, 2))


def _reference(x_nchw, w1, b1, w2, b2):
    """Pure-JAX f32 reference mirroring the PyTorch forward (NCHW convs)."""
    def conv(x, w_hwio, b):
        w_oihw = jnp.transpose(w_hwio, (3, 2, 0, 1))
        y = lax.conv_general_dilated(
            x, w_oihw, window_strides=(1, 1), padding="SAME",
            dimension_numbers=("NCHW", "OIHW", "NCHW"))
        return y + b[None, :, None, None]

    res = conv(x_nchw, w1, b1)
    res = jnp.maximum(res, 0.0)
    res = conv(res, w2, b2)
    return res + x_nchw


if __name__ == "__main__":
    key = jax.random.PRNGKey(0)
    k_x, k_w1, k_b1, k_w2, k_b2 = jax.random.split(key, 5)

    N, C, H, W = 2, 8, 16, 16  # n_feat = 8, kernel_size = 3  (W*C = 128 lanes)

    x = jax.random.normal(k_x, (N, C, H, W), jnp.float32)
    # Deterministic synthetic parameters (HWIO layout for the kernel wrapper).
    w1 = jax.random.normal(k_w1, (KSIZE, KSIZE, C, C), jnp.float32) * 0.1
    b1 = jax.random.normal(k_b1, (C,), jnp.float32) * 0.1
    w2 = jax.random.normal(k_w2, (KSIZE, KSIZE, C, C), jnp.float32) * 0.1
    b2 = jax.random.normal(k_b2, (C,), jnp.float32) * 0.1

    fn = jax.jit(residual_block)
    out = fn(x, w1, b1, w2, b2)
    out = jax.block_until_ready(out)

    ref = _reference(x, w1, b1, w2, b2)
    assert out.shape == (N, C, H, W)
    # bf16 MXU inputs with f32 accumulation -> relaxed tolerance vs f32 ref.
    err = jnp.max(jnp.abs(out - ref))
    assert jnp.allclose(out, ref, atol=5e-2, rtol=5e-2), f"mismatch, max err {err}"

    print("KERNEL_OK")
</pallas_src>

<mosaic_0001>
module attributes {stable_mosaic.version = 11 : i64} {
  func.func @_residual_block_kernel(%arg0: i32, %arg1: memref<2x16x128xf32, #tpu.memory_space<vmem>>, %arg2: memref<384x128xbf16, #tpu.memory_space<vmem>>, %arg3: memref<1x128xf32, #tpu.memory_space<vmem>>, %arg4: memref<384x128xbf16, #tpu.memory_space<vmem>>, %arg5: memref<1x128xf32, #tpu.memory_space<vmem>>, %arg6: memref<2x16x128xf32, #tpu.memory_space<vmem>>, %arg7: memref<36x128xbf16, #tpu.memory_space<vmem>>, %arg8: memref<34x384xbf16, #tpu.memory_space<vmem>>) attributes {dimension_semantics = [#tpu.dimension_semantics<parallel>], iteration_bounds = array<i64: 1>, scalar_prefetch = 0 : i64, scratch_operands = 2 : i64, tpu.core_type = #tpu.core_type<tc>, window_params = [{transform_indices = @transform_0, window_bounds = array<i64: 2, 16, 128>}, {pipeline_mode = #tpu.pipeline_mode<synchronous>, transform_indices = @transform_1, window_bounds = array<i64: 384, 128>}, {pipeline_mode = #tpu.pipeline_mode<synchronous>, transform_indices = @transform_2, window_bounds = array<i64: 1, 128>}, {pipeline_mode = #tpu.pipeline_mode<synchronous>, transform_indices = @transform_3, window_bounds = array<i64: 384, 128>}, {pipeline_mode = #tpu.pipeline_mode<synchronous>, transform_indices = @transform_4, window_bounds = array<i64: 1, 128>}, {transform_indices = @transform_5, window_bounds = array<i64: 2, 16, 128>}]} {
    %cst = arith.constant 0.000000e+00 : bf16
    %0 = vector.broadcast %cst : bf16 to vector<1x128xbf16>
    %c0 = arith.constant 0 : index
    %c0_0 = arith.constant 0 : index
    %1 = vector.load %arg7[%c0, %c0_0] : memref<36x128xbf16, #tpu.memory_space<vmem>>, vector<1x128xbf16>
    tpu.vector_store %arg7[%c0, %c0_0], %0 {strides = array<i32>} : memref<36x128xbf16, #tpu.memory_space<vmem>>, vector<1x128xbf16>,
    %c17 = arith.constant 17 : index
    %c0_1 = arith.constant 0 : index
    %2 = vector.load %arg7[%c17, %c0_1] : memref<36x128xbf16, #tpu.memory_space<vmem>>, vector<1x128xbf16>
    tpu.vector_store %arg7[%c17, %c0_1], %0 {strides = array<i32>} : memref<36x128xbf16, #tpu.memory_space<vmem>>, vector<1x128xbf16>,
    %c18 = arith.constant 18 : index
    %c0_2 = arith.constant 0 : index
    %3 = vector.load %arg7[%c18, %c0_2] : memref<36x128xbf16, #tpu.memory_space<vmem>>, vector<1x128xbf16>
    tpu.vector_store %arg7[%c18, %c0_2], %0 {strides = array<i32>} : memref<36x128xbf16, #tpu.memory_space<vmem>>, vector<1x128xbf16>,
    %c35 = arith.constant 35 : index
    %c0_3 = arith.constant 0 : index
    %4 = vector.load %arg7[%c35, %c0_3] : memref<36x128xbf16, #tpu.memory_space<vmem>>, vector<1x128xbf16>
    tpu.vector_store %arg7[%c35, %c0_3], %0 {strides = array<i32>} : memref<36x128xbf16, #tpu.memory_space<vmem>>, vector<1x128xbf16>,
    %c0_4 = arith.constant 0 : index
    %c0_5 = arith.constant 0 : index
    %c0_6 = arith.constant 0 : index
    %5 = vector.load %arg1[%c0_4, %c0_5, %c0_6] : memref<2x16x128xf32, #tpu.memory_space<vmem>>, vector<1x16x128xf32>
    %6 = vector.shape_cast %5 : vector<1x16x128xf32> to vector<16x128xf32>
    %7 = arith.truncf %6 : vector<16x128xf32> to vector<16x128xbf16>
    %c1 = arith.constant 1 : index
    %c0_7 = arith.constant 0 : index
    %8 = vector.load %arg7[%c1, %c0_7] : memref<36x128xbf16, #tpu.memory_space<vmem>>, vector<16x128xbf16>
    tpu.vector_store %arg7[%c1, %c0_7], %7 {strides = array<i32>} : memref<36x128xbf16, #tpu.memory_space<vmem>>, vector<16x128xbf16>,
    %c1_8 = arith.constant 1 : index
    %c0_9 = arith.constant 0 : index
    %c0_10 = arith.constant 0 : index
    %9 = vector.load %arg1[%c1_8, %c0_9, %c0_10] : memref<2x16x128xf32, #tpu.memory_space<vmem>>, vector<1x16x128xf32>
    %10 = vector.shape_cast %9 : vector<1x16x128xf32> to vector<16x128xf32>
    %11 = arith.truncf %10 : vector<16x128xf32> to vector<16x128xbf16>
    %c19 = arith.constant 19 : index
    %c0_11 = arith.constant 0 : index
    %12 = vector.load %arg7[%c19, %c0_11] : memref<36x128xbf16, #tpu.memory_space<vmem>>, vector<16x128xbf16>
    tpu.vector_store %arg7[%c19, %c0_11], %11 {strides = array<i32>} : memref<36x128xbf16, #tpu.memory_space<vmem>>, vector<16x128xbf16>,
    %c0_12 = arith.constant 0 : index
    %c0_13 = arith.constant 0 : index
    %13 = vector.load %arg7[%c0_12, %c0_13] : memref<36x128xbf16, #tpu.memory_space<vmem>>, vector<34x128xbf16>
    %c0_14 = arith.constant 0 : index
    %c0_15 = arith.constant 0 : index
    %14 = vector.load %arg8[%c0_14, %c0_15] : memref<34x384xbf16, #tpu.memory_space<vmem>>, vector<34x128xbf16>
    tpu.vector_store %arg8[%c0_14, %c0_15], %13 {strides = array<i32>} : memref<34x384xbf16, #tpu.memory_space<vmem>>, vector<34x128xbf16>,
    %c1_16 = arith.constant 1 : index
    %c0_17 = arith.constant 0 : index
    %15 = vector.load %arg7[%c1_16, %c0_17] : memref<36x128xbf16, #tpu.memory_space<vmem>>, vector<34x128xbf16>
    %c0_18 = arith.constant 0 : index
    %c128 = arith.constant 128 : index
    %16 = vector.load %arg8[%c0_18, %c128] : memref<34x384xbf16, #tpu.memory_space<vmem>>, vector<34x128xbf16>
    tpu.vector_store %arg8[%c0_18, %c128], %15 {strides = array<i32>} : memref<34x384xbf16, #tpu.memory_space<vmem>>, vector<34x128xbf16>,
    %c2 = arith.constant 2 : index
    %c0_19 = arith.constant 0 : index
    %17 = vector.load %arg7[%c2, %c0_19] : memref<36x128xbf16, #tpu.memory_space<vmem>>, vector<34x128xbf16>
    %c0_20 = arith.constant 0 : index
    %c256 = arith.constant 256 : index
    %18 = vector.load %arg8[%c0_20, %c256] : memref<34x384xbf16, #tpu.memory_space<vmem>>, vector<34x128xbf16>
    tpu.vector_store %arg8[%c0_20, %c256], %17 {strides = array<i32>} : memref<34x384xbf16, #tpu.memory_space<vmem>>, vector<34x128xbf16>,
    %c0_21 = arith.constant 0 : index
    %c0_22 = arith.constant 0 : index
    %19 = vector.load %arg8[%c0_21, %c0_22] : memref<34x384xbf16, #tpu.memory_space<vmem>>, vector<34x384xbf16>
    %c0_23 = arith.constant 0 : index
    %c0_24 = arith.constant 0 : index
    %20 = vector.load %arg2[%c0_23, %c0_24] : memref<384x128xbf16, #tpu.memory_space<vmem>>, vector<384x128xbf16>
    %cst_25 = arith.constant dense<0.000000e+00> : vector<34x128xf32>
    %21 = tpu.matmul %19, %20, %cst_25 {dimension_numbers = #tpu.dot_dimension_numbers<[1], [0], [0], [1], [0, 0, 1, 1], [], []>} : vector<34x384xbf16>, vector<384x128xbf16>, vector<34x128xf32> -> vector<34x128xf32>
    %c0_26 = arith.constant 0 : index
    %c0_27 = arith.constant 0 : index
    %22 = vector.load %arg3[%c0_26, %c0_27] : memref<1x128xf32, #tpu.memory_space<vmem>>, vector<1x128xf32>
    %23 = vector.broadcast %22 : vector<1x128xf32> to vector<34x128xf32>
    %24 = arith.addf %21, %23 : vector<34x128xf32>
    %cst_28 = arith.constant 0.000000e+00 : f32
    %25 = vector.broadcast %cst_28 : f32 to vector<34x128xf32>
    %26 = arith.maximumf %24, %25 : vector<34x128xf32>
    %27 = tpu.iota {dimensions = array<i32: 0>} : vector<34x1xi32>
    %c18_i32 = arith.constant 18 : i32
    %c0_i32 = arith.constant 0 : i32
    %28 = arith.cmpi eq, %c18_i32, %c0_i32 : i32
    %c1_i32 = arith.constant 1 : i32
    %29 = arith.select %28, %c1_i32, %c18_i32 : i32
    %30 = vector.broadcast %29 : i32 to vector<34x1xi32>
    %31 = arith.remsi %27, %30 : vector<34x1xi32>
    %c0_i32_29 = arith.constant 0 : i32
    %32 = vector.broadcast %c0_i32_29 : i32 to vector<34x1xi32>
    %33 = arith.cmpi ne, %31, %32 : vector<34x1xi32>
    %c0_i32_30 = arith.constant 0 : i32
    %34 = vector.broadcast %c0_i32_30 : i32 to vector<34x1xi32>
    %35 = arith.cmpi slt, %31, %34 : vector<34x1xi32>
    %c0_i32_31 = arith.constant 0 : i32
    %36 = arith.cmpi slt, %29, %c0_i32_31 : i32
    %37 = vector.broadcast %36 : i1 to vector<34x1xi1>
    %38 = vector.broadcast %37 : vector<34x1xi1> to vector<34x1xi1>
    %39 = arith.xori %35, %38 : vector<34x1xi1>
    %40 = arith.andi %39, %33 : vector<34x1xi1>
    %41 = vector.broadcast %29 : i32 to vector<34x1xi32>
    %42 = arith.addi %31, %41 : vector<34x1xi32>
    %43 = arith.select %40, %42, %31 : vector<34x1xi1>, vector<34x1xi32>
    %c16_i32 = arith.constant 16 : i32
    %44 = vector.broadcast %c16_i32 : i32 to vector<34x1xi32>
    %45 = arith.cmpi slt, %43, %44 : vector<34x1xi32>
    %cst_32 = arith.constant 0.000000e+00 : f32
    %46 = vector.shape_cast %45 : vector<34x1xi1> to vector<34x1xi1>
    %47 = vector.broadcast %46 : vector<34x1xi1> to vector<34x128xi1>
    %48 = vector.broadcast %cst_32 : f32 to vector<34x128xf32>
    %49 = arith.select %47, %26, %48 : vector<34x128xi1>, vector<34x128xf32>
    %50 = arith.truncf %49 : vector<34x128xf32> to vector<34x128xbf16>
    %c1_33 = arith.constant 1 : index
    %c0_34 = arith.constant 0 : index
    %51 = vector.load %arg7[%c1_33, %c0_34] : memref<36x128xbf16, #tpu.memory_space<vmem>>, vector<34x128xbf16>
    tpu.vector_store %arg7[%c1_33, %c0_34], %50 {strides = array<i32>} : memref<36x128xbf16, #tpu.memory_space<vmem>>, vector<34x128xbf16>,
    %c0_35 = arith.constant 0 : index
    %c0_36 = arith.constant 0 : index
    %52 = vector.load %arg7[%c0_35, %c0_36] : memref<36x128xbf16, #tpu.memory_space<vmem>>, vector<34x128xbf16>
    %c0_37 = arith.constant 0 : index
    %c0_38 = arith.constant 0 : index
    %53 = vector.load %arg8[%c0_37, %c0_38] : memref<34x384xbf16, #tpu.memory_space<vmem>>, vector<34x128xbf16>
    tpu.vector_store %arg8[%c0_37, %c0_38], %52 {strides = array<i32>} : memref<34x384xbf16, #tpu.memory_space<vmem>>, vector<34x128xbf16>,
    %c1_39 = arith.constant 1 : index
    %c0_40 = arith.constant 0 : index
    %54 = vector.load %arg7[%c1_39, %c0_40] : memref<36x128xbf16, #tpu.memory_space<vmem>>, vector<34x128xbf16>
    %c0_41 = arith.constant 0 : index
    %c128_42 = arith.constant 128 : index
    %55 = vector.load %arg8[%c0_41, %c128_42] : memref<34x384xbf16, #tpu.memory_space<vmem>>, vector<34x128xbf16>
    tpu.vector_store %arg8[%c0_41, %c128_42], %54 {strides = array<i32>} : memref<34x384xbf16, #tpu.memory_space<vmem>>, vector<34x128xbf16>,
    %c2_43 = arith.constant 2 : index
    %c0_44 = arith.constant 0 : index
    %56 = vector.load %arg7[%c2_43, %c0_44] : memref<36x128xbf16, #tpu.memory_space<vmem>>, vector<34x128xbf16>
    %c0_45 = arith.constant 0 : index
    %c256_46 = arith.constant 256 : index
    %57 = vector.load %arg8[%c0_45, %c256_46] : memref<34x384xbf16, #tpu.memory_space<vmem>>, vector<34x128xbf16>
    tpu.vector_store %arg8[%c0_45, %c256_46], %56 {strides = array<i32>} : memref<34x384xbf16, #tpu.memory_space<vmem>>, vector<34x128xbf16>,
    %c0_47 = arith.constant 0 : index
    %c0_48 = arith.constant 0 : index
    %58 = vector.load %arg8[%c0_47, %c0_48] : memref<34x384xbf16, #tpu.memory_space<vmem>>, vector<34x384xbf16>
    %c0_49 = arith.constant 0 : index
    %c0_50 = arith.constant 0 : index
    %59 = vector.load %arg4[%c0_49, %c0_50] : memref<384x128xbf16, #tpu.memory_space<vmem>>, vector<384x128xbf16>
    %cst_51 = arith.constant dense<0.000000e+00> : vector<34x128xf32>
    %60 = tpu.matmul %58, %59, %cst_51 {dimension_numbers = #tpu.dot_dimension_numbers<[1], [0], [0], [1], [0, 0, 1, 1], [], []>} : vector<34x384xbf16>, vector<384x128xbf16>, vector<34x128xf32> -> vector<34x128xf32>
    %c0_52 = arith.constant 0 : index
    %c0_53 = arith.constant 0 : index
    %61 = vector.load %arg5[%c0_52, %c0_53] : memref<1x128xf32, #tpu.memory_space<vmem>>, vector<1x128xf32>
    %62 = vector.broadcast %61 : vector<1x128xf32> to vector<34x128xf32>
    %63 = arith.addf %60, %62 : vector<34x128xf32>
    %64 = vector.extract_strided_slice %63 {offsets = [0, 0], sizes = [16, 128], strides = [1, 1]} : vector<34x128xf32> to vector<16x128xf32>
    %c0_54 = arith.constant 0 : index
    %c0_55 = arith.constant 0 : index
    %c0_56 = arith.constant 0 : index
    %65 = vector.load %arg1[%c0_54, %c0_55, %c0_56] : memref<2x16x128xf32, #tpu.memory_space<vmem>>, vector<1x16x128xf32>
    %66 = vector.shape_cast %65 : vector<1x16x128xf32> to vector<16x128xf32>
    %67 = arith.addf %64, %66 : vector<16x128xf32>
    %c0_57 = arith.constant 0 : index
    %c0_58 = arith.constant 0 : index
    %c0_59 = arith.constant 0 : index
    %68 = vector.load %arg6[%c0_57, %c0_58, %c0_59] : memref<2x16x128xf32, #tpu.memory_space<vmem>>, vector<1x16x128xf32>
    %69 = vector.shape_cast %68 : vector<1x16x128xf32> to vector<16x128xf32>
    %70 = vector.shape_cast %67 : vector<16x128xf32> to vector<1x16x128xf32>
    tpu.vector_store %arg6[%c0_57, %c0_58, %c0_59], %70 {strides = array<i32>} : memref<2x16x128xf32, #tpu.memory_space<vmem>>, vector<1x16x128xf32>,
    %71 = vector.extract_strided_slice %63 {offsets = [18, 0], sizes = [16, 128], strides = [1, 1]} : vector<34x128xf32> to vector<16x128xf32>
    %c1_60 = arith.constant 1 : index
    %c0_61 = arith.constant 0 : index
    %c0_62 = arith.constant 0 : index
    %72 = vector.load %arg1[%c1_60, %c0_61, %c0_62] : memref<2x16x128xf32, #tpu.memory_space<vmem>>, vector<1x16x128xf32>
    %73 = vector.shape_cast %72 : vector<1x16x128xf32> to vector<16x128xf32>
    %74 = arith.addf %71, %73 : vector<16x128xf32>
    %c1_63 = arith.constant 1 : index
    %c0_64 = arith.constant 0 : index
    %c0_65 = arith.constant 0 : index
    %75 = vector.load %arg6[%c1_63, %c0_64, %c0_65] : memref<2x16x128xf32, #tpu.memory_space<vmem>>, vector<1x16x128xf32>
    %76 = vector.shape_cast %75 : vector<1x16x128xf32> to vector<16x128xf32>
    %77 = vector.shape_cast %74 : vector<16x128xf32> to vector<1x16x128xf32>
    tpu.vector_store %arg6[%c1_63, %c0_64, %c0_65], %77 {strides = array<i32>} : memref<2x16x128xf32, #tpu.memory_space<vmem>>, vector<1x16x128xf32>,
    return
  }
  func.func @transform_0(%arg0: i32) -> (i32, i32, i32) {
    %c0_i32 = arith.constant 0 : i32
    %c0_i32_0 = arith.constant 0 : i32
    %c0_i32_1 = arith.constant 0 : i32
    return %arg0, %c0_i32, %c0_i32_0 : i32, i32, i32
  }
  func.func @transform_1(%arg0: i32) -> (i32, i32) {
    %c0_i32 = arith.constant 0 : i32
    %c0_i32_0 = arith.constant 0 : i32
    %c0_i32_1 = arith.constant 0 : i32
    return %c0_i32, %c0_i32_0 : i32, i32
  }
  func.func @transform_2(%arg0: i32) -> (i32, i32) {
    %c0_i32 = arith.constant 0 : i32
    %c0_i32_0 = arith.constant 0 : i32
    %c0_i32_1 = arith.constant 0 : i32
    return %c0_i32, %c0_i32_0 : i32, i32
  }
  func.func @transform_3(%arg0: i32) -> (i32, i32) {
    %c0_i32 = arith.constant 0 : i32
    %c0_i32_0 = arith.constant 0 : i32
    %c0_i32_1 = arith.constant 0 : i32
    return %c0_i32, %c0_i32_0 : i32, i32
  }
  func.func @transform_4(%arg0: i32) -> (i32, i32) {
    %c0_i32 = arith.constant 0 : i32
    %c0_i32_0 = arith.constant 0 : i32
    %c0_i32_1 = arith.constant 0 : i32
    return %c0_i32, %c0_i32_0 : i32, i32
  }
  func.func @transform_5(%arg0: i32) -> (i32, i32, i32) {
    %c0_i32 = arith.constant 0 : i32
    %c0_i32_0 = arith.constant 0 : i32
    %c0_i32_1 = arith.constant 0 : i32
    return %arg0, %c0_i32, %c0_i32_0 : i32, i32, i32
  }
}

</mosaic_0001>

<bundles_post_ra>
// kernel: tile.13
= control target key start
LH: loop header
LB: loop body
LE: loop exit
PB: predicated region body
PF: predicated region fallthrough
CT: control target
= control target key end

     0   :  { %s28_s0 = inlined_call_operand.vmem [shape: f32[8], index: 0, kind: input, shape index: {}]   ;;  %s29_s1 = inlined_call_operand.vmem [shape: f32[16,8], index: 1, kind: output, shape index: {}]  }
   0x1   :  { %v4_v0 = vld [vmem:[%s28_s0] ss:$0 sm:$0xff] }
   0x2   :  { %5 = vst [vmem:[%s29_s1] sm:$0xff] %v4_v0  ;;  %8 = vst [vmem:[%s29_s1 + $0x8] sm:$0xff] %v4_v0 }

// kernel: tile.14
= control target key start
LH: loop header
LB: loop body
LE: loop exit
PB: predicated region body
PF: predicated region fallthrough
CT: control target
= control target key end

     0   :  { %s131_s10 = smov 120   ;;  %s132_s11 = smov 104   ;;  %vm3_vm0 = vcmask 64512   ;;  %vm9_vm1 = vcmask 1048512   ;;  %vm15_vm2 = vcmask 982912   ;;  %vm21_vm3 = vcmask 917312   ;;  %s207_s0 = inlined_call_operand.vmem [shape: f32[16,8], index: 0, kind: input, shape index: {}]   ;;  %s208_s1 = inlined_call_operand.vmem [shape: f32[1,128], index: 1, kind: output, shape index: {}]  }
   0x1   :  { %v101_v0 = vld [vmem:[%s207_s0 + $0xf] sm:$0x1]   ;;  %v103_v1 = vld [vmem:[%s207_s0 + $0xd] sm:$0x1]   ;;  %v102_v2 = vld [vmem:[%s207_s0 + $0xe] sm:$0x1]  }
   0x2   :  { %7 = vrot.lane.b32.xlu0 %v101_v0, %s131_s10  ;;  %19 = vrot.lane.b32.xlu1 %v103_v1, %s132_s11  ;;  %v104_v3 = vld [vmem:[%s207_s0 + $0xc] sm:$0x1]   ;;  %s133_s16 = smov 112   ;;  %s134_s17 = smov 96   ;;  %v105_v4 = vld [vmem:[%s207_s0 + $0xb] sm:$0x1]  }
   0x3   :  { %v106_v5 = vld [vmem:[%s207_s0 + $0xa] sm:$0x1]   ;;  %v2_v6 = vld [vmem:[%s207_s0] sm:$0x1]   ;;  %s135_s24 = smov 88   ;;  %s136_s25 = smov 80  }
   0x4   :  { %4 = vst.msk [vmem:[#allocation0] sm:$0x1] %vm3_vm0, %v2_v6   ;;  %v107_v7 = vld [vmem:[%s207_s0 + $0x9] sm:$0x1]   ;;  %v108_v8 = vld [vmem:[%s207_s0 + $0x8] sm:$0x1]  }
   0x5   :  { %s137_s30 = smov 72   ;;  %s138_s2 = smov 64   ;;  %v109_v9 = vld [vmem:[%s207_s0 + $0x7] sm:$0x1]   ;;  %v110_v10 = vld [vmem:[%s207_s0 + $0x6] sm:$0x1]  }
   0x6   :  { %13 = vrot.lane.b32.xlu0 %v102_v2, %s133_s16  ;;  %25 = vrot.lane.b32.xlu1 %v104_v3, %s134_s17  ;;  %s139_s7 = smov 56   ;;  %s140_s8 = smov 48   ;;  %v111_v11 = vld [vmem:[%s207_s0 + $0x5] sm:$0x1]   ;;  %v112_v12 = vld [vmem:[%s207_s0 + $0x4] sm:$0x1]  }
   0x7   :  { %s141_s13 = smov 40   ;;  %s142_s14 = smov 32   ;;  %v113_v13 = vld [vmem:[%s207_s0 + $0x3] sm:$0x1]   ;;  %v114_v14 = vld [vmem:[%s207_s0 + $0x2] sm:$0x1]  }
   0x8   :  { %s143_s19 = smov 24   ;;  %s144_s20 = smov 16   ;;  %v115_v15 = vld [vmem:[%s207_s0 + $0x1] sm:$0x1]   ;;  %vm27_vm4 = vcmask 851712   ;;  %vm33_vm5 = vcmask 786112  }
   0x9   :  { %s145_s0 = smov 8   ;;  %vm39_vm6 = vcmask 720512   ;;  %vm45_vm7 = vcmask 654912   ;;  %vm51_vm8 = vcmask 589312   ;;  %vm57_vm9 = vcmask 523712  }
   0xa   :  { %31 = vrot.lane.b32.xlu0 %v105_v4, %s135_s24  ;;  %37 = vrot.lane.b32.xlu1 %v106_v5, %s136_s25  ;;  %vm63_vm10 = vcmask 458112   ;;  %vm69_vm11 = vcmask 392512   ;;  %vm75_vm12 = vcmask 326912   ;;  %vm81_vm13 = vcmask 261312  }
   0xb   :  { %vm87_vm14 = vcmask 195712   ;;  %vm93_vm15 = vcmask 130112  }
   0xe   :  { %43 = vrot.lane.b32.xlu0 %v107_v7, %s137_s30  ;;  %49 = vrot.lane.b32.xlu1 %v108_v8, %s138_s2 }
  0x12   :  { %55 = vrot.lane.b32.xlu0 %v109_v9, %s139_s7  ;;  %61 = vrot.lane.b32.xlu1 %v110_v10, %s140_s8 }
  0x16   :  { %67 = vrot.lane.b32.xlu0 %v111_v11, %s141_s13  ;;  %73 = vrot.lane.b32.xlu1 %v112_v12, %s142_s14 }
  0x1a   :  { %79 = vrot.lane.b32.xlu0 %v113_v13, %s143_s19  ;;  %85 = vrot.lane.b32.xlu1 %v114_v14, %s144_s20 }
  0x1e   :  { %91 = vrot.lane.b32.xlu0 %v115_v15, %s145_s0 }
  0x74   :  { %v8_v16 = vpop.permute.xlu0 %7   ;;  %v20_v17 = vpop.permute.xlu1 %19  }
  0x75   :  { %10 = vst.msk [vmem:[#allocation0] sm:$0x1] %vm9_vm1, %v8_v16  }
  0x78   :  { %v14_v18 = vpop.permute.xlu0 %13   ;;  %v26_v19 = vpop.permute.xlu1 %25  }
  0x79   :  { %16 = vst.msk [vmem:[#allocation0] sm:$0x1] %vm15_vm2, %v14_v18  }
  0x7a   :  { %22 = vst.msk [vmem:[#allocation0] sm:$0x1] %vm21_vm3, %v20_v17  }
  0x7b   :  { %28 = vst.msk [vmem:[#allocation0] sm:$0x1] %vm27_vm4, %v26_v19  }
  0x7c   :  { %v32_v20 = vpop.permute.xlu0 %31   ;;  %v38_v21 = vpop.permute.xlu1 %37  }
  0x7d   :  { %34 = vst.msk [vmem:[#allocation0] sm:$0x1] %vm33_vm5, %v32_v20  }
  0x7e   :  { %40 = vst.msk [vmem:[#allocation0] sm:$0x1] %vm39_vm6, %v38_v21  }
  0x80   :  { %v44_v22 = vpop.permute.xlu0 %43   ;;  %v50_v23 = vpop.permute.xlu1 %49  }
  0x81   :  { %46 = vst.msk [vmem:[#allocation0] sm:$0x1] %vm45_vm7, %v44_v22  }
  0x82   :  { %52 = vst.msk [vmem:[#allocation0] sm:$0x1] %vm51_vm8, %v50_v23  }
  0x84   :  { %v56_v24 = vpop.permute.xlu0 %55   ;;  %v62_v25 = vpop.permute.xlu1 %61  }
  0x85   :  { %58 = vst.msk [vmem:[#allocation0] sm:$0x1] %vm57_vm9, %v56_v24  }
  0x86   :  { %64 = vst.msk [vmem:[#allocation0] sm:$0x1] %vm63_vm10, %v62_v25  }
  0x88   :  { %v68_v26 = vpop.permute.xlu0 %67   ;;  %v74_v27 = vpop.permute.xlu1 %73  }
  0x89   :  { %70 = vst.msk [vmem:[#allocation0] sm:$0x1] %vm69_vm11, %v68_v26  }
  0x8a   :  { %76 = vst.msk [vmem:[#allocation0] sm:$0x1] %vm75_vm12, %v74_v27  }
  0x8c   :  { %v80_v28 = vpop.permute.xlu0 %79   ;;  %v86_v29 = vpop.permute.xlu1 %85  }
  0x8d   :  { %82 = vst.msk [vmem:[#allocation0] sm:$0x1] %vm81_vm13, %v80_v28  }
  0x8e   :  { %88 = vst.msk [vmem:[#allocation0] sm:$0x1] %vm87_vm14, %v86_v29  }
  0x90   :  { %v92_v30 = vpop.permute.xlu0 %91  }
  0x91   :  { %94 = vst.msk [vmem:[#allocation0] sm:$0x1] %vm93_vm15, %v92_v30  }
  0x98   :  { %v98_v31 = vld [vmem:[#allocation0] sm:$0x1] }
  0x99   :  { %100 = vst [vmem:[%s208_s1] sm:$0x1] %v98_v31 }

// kernel: residual_block.1
= control target key start
LH: loop header
LB: loop body
LE: loop exit
PB: predicated region body
PF: predicated region fallthrough
CT: control target
= control target key end

     0   :  { %v1612_v1 = vmov 0.0   ;;  %vm1613_vm0 = vmmov 0   ;;  %vm22_vm1 = vsmask.f32 256  ;;  %v24_v19 = vld [vmem:[#allocation2] sm:$0x1]  ;;  %s2035_s1 = inlined_call_operand.vmem [shape: bf16[384,128], index: 1, kind: input, shape index: {}]   ;;  %s2036_s0 = inlined_call_operand.vmem [shape: f32[2,16,128], index: 0, kind: input, shape index: {}]   ;;  %s2037_s3 = inlined_call_operand.vmem [shape: bf16[384,128], index: 3, kind: input, shape index: {}]   ;;  %s2038_s2 = inlined_call_operand.vmem [shape: f32[1,128], index: 2, kind: input, shape index: {}]   ;;  %s2039_s4 = inlined_call_operand.vmem [shape: f32[1,128], index: 4, kind: input, shape index: {}]   ;;  %s2040_s5 = inlined_call_operand.vmem [shape: f32[2,16,128], index: 5, kind: output, shape index: {}]  }
   0x1   :  { %v1541_v0 = vld [vmem:[%s2035_s1 + $0x40] sm:$0xff]   ;;  %1473 = vmatprep.subr.bf16.mxu1 %v1612_v1  ;;  %v1544_v4 = vld [vmem:[%s2035_s1 + $0x48] sm:$0xff]   ;;  %1489 = vmatprep.mubr.msk.bf16.mxu1 %vm1613_vm0, %v1612_v1  ;;  %v1547_v7 = vld [vmem:[%s2035_s1 + $0x50] sm:$0xff]   ;;  %vm21_vm2 = vcmask 1040384   ;;  %vm32_vm3 = vcmask 1041409   ;;  %vm73_vm10 = vcmask 1043456  }
   0x2   :  { %v1542_v2 = vld [vmem:[%s2035_s1] sm:$0xff]   ;;  %1383 = vmatprep.subr.bf16.mxu0 %v1541_v0  ;;  %v1545_v5 = vld [vmem:[%s2035_s1 + $0x8] sm:$0xff]   ;;  %v1548_v8 = vld [vmem:[%s2035_s1 + $0x10] sm:$0xff]   ;;  %vm27_vm5 = vsmask.f32 7938  ;;  %vm115_vm13 = vcmask 1043457  }
   0x3   :  { %v1543_v3 = vld [vmem:[%s2035_s1 + $0x80] sm:$0xff]   ;;  %1384 = vmatpush3.bf16.msra.mxu0 %v1542_v2  ;;  %v1546_v6 = vld [vmem:[%s2035_s1 + $0x88] sm:$0xff]   ;;  %v1549_v9 = vld [vmem:[%s2035_s1 + $0x90] sm:$0xff]   ;;  %vm33_vm6 = vsmask.f32 1280 }
   0x4   :  { %1474 = vmatpush3.bf16.msra.mxu1 %v1543_v3  ;;  %1385 = vmatprep.subr.bf16.mxu0 %v1544_v4  ;;  %v1550_v10 = vld [vmem:[%s2035_s1 + $0x58] sm:$0xff]   ;;  %v1553_v13 = vld [vmem:[%s2035_s1 + $0x60] sm:$0xff]   ;;  %v1556_v16 = vld [vmem:[%s2035_s1 + $0x68] sm:$0xff]   ;;  %vm38_vm8 = vsmask.f32 7942 }
   0x5   :  { %1475 = vmatprep.subr.bf16.mxu1 %v1612_v1  ;;  %v1551_v11 = vld [vmem:[%s2035_s1 + $0x18] sm:$0xff]   ;;  %v1554_v14 = vld [vmem:[%s2035_s1 + $0x20] sm:$0xff]   ;;  %v1557_v17 = vld [vmem:[%s2035_s1 + $0x28] sm:$0xff]   ;;  %vm51_vm12 = vsmask.f32 4368 }
   0x6   :  { %v1552_v12 = vld [vmem:[%s2035_s1 + $0x98] sm:$0xff]   ;;  %v1555_v15 = vld [vmem:[%s2035_s1 + $0xa0] sm:$0xff]   ;;  %v1558_v18 = vld [vmem:[%s2035_s1 + $0xa8] sm:$0xff]  }
   0x7   :  { %1386 = vmatpush3.bf16.msra.mxu0 %v1545_v5  ;;  %v1559_v20 = vld [vmem:[%s2035_s1 + $0x70] sm:$0xff]   ;;  %v1562_v23 = vld [vmem:[%s2035_s1 + $0x78] sm:$0xff]   ;;  %vm1720_vm4 = vmand %vm21_vm2, %vm22_vm1 }
   0x8   :  { %1476 = vmatpush3.bf16.msra.mxu1 %v1546_v6  ;;  %1387 = vmatprep.subr.bf16.mxu0 %v1547_v7  ;;  %v1560_v21 = vld [vmem:[%s2035_s1 + $0x30] sm:$0xff]   ;;  %v29_v25 = vld [vmem:[#allocation2 + $0x8] sm:$0x1]  ;;  %v25_v26 = vsel %vm1720_vm4, 0, %v24_v19  ;;  %vm28_vm7 = vmand %vm21_vm2, %vm27_vm5 }
   0x9   :  { %1477 = vmatprep.subr.bf16.mxu1 %v1612_v1  ;;  %v1561_v22 = vld [vmem:[%s2035_s1 + $0xb0] sm:$0xff]   ;;  %v35_v27 = vld [vmem:[#allocation2 + $0x8] sm:$0x2]  ;;  %v43_v28 = vld [vmem:[%s2036_s0] sm:$0xff]  ;;  %26 = vst [vmem:[#allocation2] sm:$0x1] %v25_v26 }
   0xa   :  { %v30_v29 = vsel %vm28_vm7, 0, %v29_v25  ;;  %vm34_vm9 = vmand %vm32_vm3, %vm33_vm6  ;;  %v44_v30 = vld [vmem:[%s2036_s0 + $0x8] sm:$0xff]  ;;  %v1374_v31 = vpack.c.bf16 %v43_v28, %v43_v28  ;;  %v1290_v32 = vld [vmem:[%s2036_s0 + $0x10] sm:$0xff] }
   0xb   :  { %1388 = vmatpush3.bf16.msra.mxu0 %v1548_v8  ;;  %31 = vst [vmem:[#allocation2 + $0x8] sm:$0x1] %v30_v29  ;;  %v36_v33 = vsel %vm34_vm9, 0, %v35_v27  ;;  %vm1742_vm11 = vmand %vm32_vm3, %vm38_vm8  ;;  %v1375_v35 = vpack.c.bf16 %v44_v30, %v44_v30  ;;  %v1376_v36 = vpack.c.bf16 %v1290_v32, %v1290_v32  ;;  %v1563_v37 = vld [vmem:[%s2035_s1 + $0x38] sm:$0xff]   ;;  %v40_v45 = vld [vmem:[#allocation2 + $0x10] sm:$0x2] }
   0xc   :  { %1478 = vmatpush3.bf16.msra.mxu1 %v1549_v9  ;;  %1389 = vmatprep.subr.bf16.mxu0 %v1550_v10  ;;  %37 = vst [vmem:[#allocation2 + $0x8] sm:$0x2] %v36_v33  ;;  %v54_v38 = vshrl.u32 %v1374_v31, 16  ;;  %v57_v39 = vshll.u32 %v1374_v31, 16  ;;  %v1566_v40 = vld [vmem:[%s2035_s1 + $0xb8] sm:$0xff]   ;;  %v41_v47 = vsel %vm1742_vm11, 0, %v40_v45  ;;  %vm1760_vm14 = vmand %vm73_vm10, %vm27_vm5 }
   0xd   :  { %1479 = vmatprep.subr.bf16.mxu1 %v1612_v1  ;;  %v62_v41 = vshrl.u32 %v1375_v35, 16  ;;  %v65_v42 = vshll.u32 %v1375_v35, 16  ;;  %v94_v43 = vshrl.u32 %v1376_v36, 16  ;;  %v97_v44 = vshll.u32 %v1376_v36, 16  ;;  %v1291_v48 = vld [vmem:[%s2036_s0 + $0x18] sm:$0xff]  ;;  %vm1766_vm15 = vmor %vm22_vm1, %vm51_vm12 }
   0xe   :  { %v56_v46 = vrot.slane %v54_v38, 7  ;;  %42 = vst [vmem:[#allocation2 + $0x10] sm:$0x2] %v41_v47  ;;  %v1377_v53 = vpack.c.bf16 %v1291_v48, %v1291_v48  ;;  %vm1772_vm2 = vmand %vm115_vm13, %vm38_vm8  ;;  %vm91_vm1 = vsmask.f32 5392  ;;  %vm121_vm3 = vcmask 1041408  }
   0xf   :  { %1390 = vmatpush3.bf16.msra.mxu0 %v1551_v11  ;;  %v64_v49 = vrot.slane %v62_v41, 7  ;;  %v96_v51 = vrot.slane %v94_v43, 6  ;;  %v99_v52 = vrot.slane %v97_v44, 7  ;;  %vm92_vm5 = vmor %vm33_vm6, %vm91_vm1  ;;  %vm142_vm8 = vsmask.f32 7440 }
  0x10   :  { %1480 = vmatpush3.bf16.msra.mxu1 %v1552_v12  ;;  %1391 = vmatprep.subr.bf16.mxu0 %v1553_v13  ;;  %v59_v55 = vor.u32 %v57_v39, %v56_v46  ;;  %v60_v56 = vrot.slane %v56_v46, 4  ;;  %v75_v59 = vld [vmem:[#allocation2] sm:$0xf]  ;;  %v103_v62 = vshrl.u32 %v1377_v53, 16  ;;  %v106_v2 = vshll.u32 %v1377_v53, 16  ;;  %vm1789_vm7 = vmand %vm121_vm3, %vm33_vm6 }
  0x11   :  { %1481 = vmatprep.subr.bf16.mxu1 %v1612_v1  ;;  %v67_v57 = vor.u32 %v65_v42, %v64_v49  ;;  %v69_v58 = vrot.slane %v64_v49, 4  ;;  %v100_v60 = vor.u32 %v99_v52, %v96_v51  ;;  %vm213_vm9 = vcmask 1042432  }
  0x12   :  { %v76_v63 = vsel %vm1760_vm14, %v59_v55, %v75_v59  ;;  %v79_v0 = vld [vmem:[#allocation2 + $0x8] sm:$0x1]  ;;  %v105_v6 = vrot.slane %v103_v62, 6  ;;  %v108_v9 = vrot.slane %v106_v2, 7  ;;  %vm214_vm10 = vcmask 1046532  }
  0x13   :  { %1392 = vmatpush3.bf16.msra.mxu0 %v1554_v14  ;;  %v68_v3 = vsel %vm1766_vm15, %v60_v56, %v67_v57  ;;  %77 = vst [vmem:[#allocation2] sm:$0xf] %v76_v63  ;;  %v80_v4 = vsel %vm1720_vm4, %v69_v58, %v79_v0  ;;  %v117_v5 = vld [vmem:[#allocation2 + $0x8] sm:$0xe]  ;;  %v101_v8 = vrot.slane %v100_v60, 4  ;;  %vm1797_vm6 = vmor %vm213_vm9, %vm214_vm10 }
  0x14   :  { %1482 = vmatpush3.bf16.msra.mxu1 %v1555_v15  ;;  %1393 = vmatprep.subr.bf16.mxu0 %v1556_v16  ;;  %78 = vst [vmem:[#allocation2 + $0x4] sm:$0xf] %v68_v3  ;;  %81 = vst [vmem:[#allocation2 + $0x8] sm:$0x1] %v80_v4  ;;  %v118_v7 = vsel %vm1772_vm2, %v100_v60, %v117_v5  ;;  %v109_v10 = vor.u32 %v108_v9, %v105_v6  ;;  %vm141_vm4 = vsmask.f32 3328 }
  0x15   :  { %1483 = vmatprep.subr.bf16.mxu1 %v1612_v1  ;;  %119 = vst [vmem:[#allocation2 + $0x8] sm:$0xe] %v118_v7  ;;  %v123_v12 = vld [vmem:[#allocation2 + $0x10] sm:$0x3]  ;;  %vm1803_vm11 = vmor %vm141_vm4, %vm142_vm8 }
  0x16   :  { %v110_v13 = vsel %vm92_vm5, %v101_v8, %v109_v10  ;;  %v111_v14 = vrot.slane %v109_v10, 4 }
  0x17   :  { %1394 = vmatpush3.bf16.msra.mxu0 %v1557_v17  ;;  %120 = vst [vmem:[#allocation2 + $0xc] sm:$0xf] %v110_v13 }
  0x18   :  { %1484 = vmatpush3.bf16.msra.mxu1 %v1558_v18  ;;  %1395 = vmatprep.subr.bf16.mxu0 %v1559_v20  ;;  %v124_v18 = vsel %vm1789_vm7, %v111_v14, %v123_v12 }
  0x19   :  { %1485 = vmatprep.subr.bf16.mxu1 %v1612_v1  ;;  %125 = vst [vmem:[#allocation2 + $0x10] sm:$0x3] %v124_v18 }
  0x1a   :  { %v126_v15 = vld [vmem:[#allocation2] sm:$0xf] }
  0x1b   :  { %1396 = vmatpush3.bf16.msra.mxu0 %v1560_v21  ;;  %v136_v16 = vld [vmem:[#allocation2] sm:$0xf]  ;;  %v127_v19 = vld [vmem:[#allocation2 + $0x4] sm:$0xf]  ;;  %131 = vst [vmem:[#allocation3] sm:$0xf] %v126_v15 }
  0x1c   :  { %1486 = vmatpush3.bf16.msra.mxu1 %v1561_v22  ;;  %1397 = vmatprep.subr.bf16.mxu0 %v1562_v23  ;;  %v203_v17 = vld [vmem:[#allocation2] sm:$0xe]  ;;  %v137_v20 = vld [vmem:[#allocation2 + $0x4] sm:$0xf]  ;;  %v145_v21 = vshrl.u32 %v136_v16, 16  ;;  %v148_v22 = vshll.u32 %v136_v16, 16 }
  0x1d   :  { %1487 = vmatprep.subr.bf16.mxu1 %v1612_v1  ;;  %132 = vst [vmem:[#allocation3 + $0xc] sm:$0xf] %v127_v19  ;;  %v138_v23 = vld [vmem:[#allocation2 + $0x8] sm:$0xf]  ;;  %v154_v24 = vshll.u32 %v137_v20, 16  ;;  %v158_v25 = vshrl.u32 %v137_v20, 16 }
  0x1e   :  { %v204_v26 = vld [vmem:[#allocation2 + $0x4] sm:$0xf]  ;;  %v147_v27 = vrot.slane %v145_v21, 4  ;;  %v150_v28 = vrot.slane %v148_v22, 5  ;;  %v164_v29 = vshll.u32 %v138_v23, 16  ;;  %v168_v30 = vshrl.u32 %v138_v23, 16 }
  0x1f   :  { %1398 = vmatpush3.bf16.msra.mxu0 %v1563_v37  ;;  %v205_v31 = vld [vmem:[#allocation2 + $0x8] sm:$0xf]  ;;  %v156_v33 = vrot.slane %v154_v24, 5  ;;  %v160_v34 = vrot.slane %v158_v25, 4  ;;  %v1294_v35 = vrot.slane %v203_v17, 9  ;;  %v218_v36 = vrot.slane %v204_v26, 5 }
  0x20   :  { %1488 = vmatpush3.bf16.msra.mxu1 %v1566_v40  ;;  %v128_v37 = vld [vmem:[#allocation2 + $0x8] sm:$0xf]  ;;  %v151_v38 = vor.u32 %v150_v28, %v147_v27  ;;  %v166_v39 = vrot.slane %v164_v29, 5  ;;  %v170_v40 = vrot.slane %v168_v30, 4  ;;  %v221_v41 = vrot.slane %v205_v31, 5  ;;  %v1576_v30 = vld [vmem:[%s2037_s3 + $0x80] sm:$0xff]  }
  0x21   :  { %1501 = vmatprep.subr.bf16.mxu1 %v1612_v1  ;;  %133 = vst [vmem:[#allocation3 + $0x18] sm:$0xf] %v128_v37  ;;  %v161_v43 = vor.u32 %v160_v34, %v156_v33  ;;  %v219_v44 = vsel %vm1797_vm6, %v1294_v35, %v218_v36  ;;  %v220_v45 = vrot.slane %v218_v36, 4  ;;  %v129_v46 = vld [vmem:[#allocation2 + $0xc] sm:$0xf]  ;;  %v1577_v31 = vld [vmem:[%s2037_s3 + $0x40] sm:$0xff]  }
  0x22   :  { %v139_v47 = vld [vmem:[#allocation2 + $0xc] sm:$0xf]  ;;  %v152_v48 = vrot.slane %v151_v38, 4  ;;  %v171_v49 = vor.u32 %v170_v40, %v166_v39  ;;  %235 = vst [vmem:[#allocation3 + $0x8] sm:$0xf] %v219_v44  ;;  %v223_v59 = vrot.slane %v221_v41, 4  ;;  %1428 = vmatprep.subr.bf16.mxu0 %v1577_v31 }
  0x23   :  { %134 = vst [vmem:[#allocation3 + $0x24] sm:$0xf] %v129_v46  ;;  %v174_v51 = vshll.u32 %v139_v47, 16  ;;  %v178_v52 = vshrl.u32 %v139_v47, 16  ;;  %v206_v53 = vld [vmem:[#allocation2 + $0xc] sm:$0xf]  ;;  %v222_v56 = vsel %vm1797_vm6, %v220_v45, %v221_v41 }
  0x24   :  { %v162_v55 = vrot.slane %v161_v43, 4  ;;  %v140_v57 = vld [vmem:[#allocation2 + $0x10] sm:$0x3]  ;;  %v157_v60 = vsel %vm1803_vm11, %v152_v48, %v156_v33  ;;  %v172_v61 = vrot.slane %v171_v49, 4  ;;  %236 = vst [vmem:[#allocation3 + $0x14] sm:$0xf] %v222_v56 }
  0x25   :  { %v207_v58 = vld [vmem:[#allocation2 + $0x10] sm:$0x3]  ;;  %v176_v62 = vrot.slane %v174_v51, 5  ;;  %v180_v63 = vrot.slane %v178_v52, 4  ;;  %198 = vst [vmem:[#allocation3 + $0x4] sm:$0xf] %v157_v60 }
  0x26   :  { %v130_v0 = vld [vmem:[#allocation2 + $0x10] sm:$0x1]  ;;  %v167_v2 = vsel %vm1803_vm11, %v162_v55, %v166_v39  ;;  %v184_v3 = vshll.u32 %v140_v57, 16  ;;  %v224_v4 = vrot.slane %v206_v53, 5  ;;  %v227_v5 = vrot.slane %v207_v58, 5  ;;  %v1578_v33 = vld [vmem:[%s2037_s3] sm:$0xff]  }
  0x27   :  { %135 = vst [vmem:[#allocation3 + $0x30] sm:$0x1] %v130_v0  ;;  %199 = vst [vmem:[#allocation3 + $0x10] sm:$0xf] %v167_v2  ;;  %v177_v6 = vsel %vm1803_vm11, %v172_v61, %v176_v62  ;;  %v181_v7 = vor.u32 %v180_v63, %v176_v62  ;;  %v188_v8 = vshrl.u32 %v140_v57, 16  ;;  %v1579_v34 = vld [vmem:[%s2037_s3 + $0x88] sm:$0xff]   ;;  %v609_v58 = vlaneseq }
  0x28   :  { %v186_v9 = vrot.slane %v184_v3, 5  ;;  %200 = vst [vmem:[#allocation3 + $0x1c] sm:$0xf] %v177_v6  ;;  %v225_v10 = vsel %vm1797_vm6, %v223_v59, %v224_v4  ;;  %v226_v12 = vrot.slane %v224_v4, 4  ;;  %v229_v13 = vrot.slane %v227_v5, 4  ;;  %v1580_v35 = vld [vmem:[%s2037_s3 + $0x48] sm:$0xff]  }
  0x29   :  { %v182_v14 = vrot.slane %v181_v7, 4  ;;  %237 = vst [vmem:[#allocation3 + $0x20] sm:$0xf] %v225_v10  ;;  %v190_v15 = vrot.slane %v188_v8, 4  ;;  %v1567_v22 = vld [vmem:[#allocation3] ss:$12 sps:$4 sm:$0xff]  }
  0x2a   :  { %v228_v16 = vsel %vm1797_vm6, %v226_v12, %v227_v5  ;;  %239 = vst [vmem:[#allocation3 + $0x38] sm:$0x1] %v229_v13  ;;  %v1571_v25 = vld [vmem:[#allocation3 + $0x18] ss:$12 sps:$4 sm:$0xff]   ;;  %v1582_v37 = vld [vmem:[%s2037_s3 + $0x90] sm:$0xff]   ;;  %v1588_v44 = vld [vmem:[%s2037_s3 + $0xa0] sm:$0xff]  }
  0x2b   :  { %v187_v17 = vsel %vm1803_vm11, %v182_v14, %v186_v9  ;;  %238 = vst [vmem:[#allocation3 + $0x2c] sm:$0xf] %v228_v16  ;;  %v191_v18 = vor.u32 %v190_v15, %v186_v9  ;;  %v1568_v19 = vld [vmem:[#allocation3 + $0x8] ss:$12 sps:$4 sm:$0xff]   ;;  %v1583_v38 = vld [vmem:[%s2037_s3 + $0x50] sm:$0xff]   ;;  %v1589_v45 = vld [vmem:[%s2037_s3 + $0x60] sm:$0xff]  }
  0x2c   :  { %201 = vst [vmem:[#allocation3 + $0x28] sm:$0xf] %v187_v17  ;;  %1490 = vmatmul.mubr.bf16.vlgmr.msra.gmra.mrb[0].mxu1 %v1568_v19  ;;  %v1581_v36 = vld [vmem:[%s2037_s3 + $0x8] sm:$0xff]   ;;  %v1584_v39 = vld [vmem:[%s2037_s3 + $0x10] sm:$0xff]   ;;  %v1585_v40 = vld [vmem:[%s2037_s3 + $0x98] sm:$0xff]   ;;  %v610_v59 = vshrl.u32 %v609_v58, 7 }
  0x2d   :  { %v192_v20 = vrot.slane %v191_v18, 4  ;;  %1493 = vmatprep.mubr.msk.bf16.mxu1 %vm1613_vm0, %v1612_v1  ;;  %1502 = vmatpush3.bf16.msra.mxu1 %v1576_v30  ;;  %v1586_v41 = vld [vmem:[%s2037_s3 + $0x58] sm:$0xff]   ;;  %v1590_v46 = vld [vmem:[%s2037_s3 + $0x20] sm:$0xff]   ;;  %v1591_v47 = vld [vmem:[%s2037_s3 + $0xa8] sm:$0xff]  }
  0x2e   :  { %v1564_v21 = vld [vmem:[#allocation3 + $0x4] ss:$12 sps:$4 sm:$0xff]   ;;  %1503 = vmatprep.subr.bf16.mxu1 %v1612_v1  ;;  %v1592_v48 = vld [vmem:[%s2037_s3 + $0x68] sm:$0xff]   ;;  %v1594_v51 = vld [vmem:[%s2037_s3 + $0xb0] sm:$0xff]   ;;  %v611_v60 = vadd.s32 8, %v610_v59  ;;  %v612_v2 = vadd.s32 16, %v610_v59 }
  0x2f   :  { %202 = vst [vmem:[#allocation3 + $0x34] sm:$0x1] %v192_v20  ;;  %524 = vmatprep.mubr.bf16.mxu0 %v1564_v21  ;;  %v1587_v43 = vld [vmem:[%s2037_s3 + $0x18] sm:$0xff]   ;;  %v1593_v49 = vld [vmem:[%s2037_s3 + $0x28] sm:$0xff]   ;;  %v1595_v52 = vld [vmem:[%s2037_s3 + $0x70] sm:$0xff]   ;;  %v613_v3 = vadd.s32 24, %v610_v59 }
  0x30   :  { %525 = vmatmul.mubr.bf16.vlgmr.msra.gmra.mrb[0].mxu0 %v1567_v22  ;;  %v1596_v53 = vld [vmem:[%s2037_s3 + $0x30] sm:$0xff]   ;;  %v1597_v55 = vld [vmem:[%s2037_s3 + $0xb8] sm:$0xff]   ;;  %v1908_v61 = vmul.u32.u64.low 3817748708, %v610_v59  ;;  %v1909_v62 = vmul.u32.u64.high 3817748708, %v610_v59, %v1908_v61  ;;  %v1911_v63 = vmul.u32.u64.low 3817748708, %v611_v60  ;;  %v1912_v0 = vmul.u32.u64.high 3817748708, %v611_v60, %v1911_v63 }
  0x31   :  { %v1575_v28 = vld [vmem:[#allocation3 + $0x38] ss:$0 sps:$4 sm:$0x11]   ;;  %1429 = vmatpush3.bf16.msra.mxu0 %v1578_v33  ;;  %1504 = vmatpush3.bf16.msra.mxu1 %v1579_v34  ;;  %v1598_v56 = vld [vmem:[%s2037_s3 + $0x78] sm:$0xff]   ;;  %v1914_v4 = vmul.u32.u64.low 3817748708, %v612_v2  ;;  %v1915_v5 = vmul.u32.u64.high 3817748708, %v612_v2, %v1914_v4 }
  0x32   :  { %v1572_v23 = vld [vmem:[#allocation3 + $0x20] ss:$12 sps:$4 sm:$0xff]   ;;  %1430 = vmatprep.subr.bf16.mxu0 %v1580_v35  ;;  %1505 = vmatprep.subr.bf16.mxu1 %v1612_v1  ;;  %v1599_v57 = vld [vmem:[%s2037_s3 + $0x38] sm:$0xff]   ;;  %v621_v6 = vshrl.u32 %v1909_v62, 4  ;;  %v632_v7 = vshrl.u32 %v1912_v0, 4  ;;  %v614_v12 = vadd.s32 32, %v610_v59 }
  0x33   :  { %v1569_v24 = vld [vmem:[#allocation3 + $0x1c] ss:$12 sps:$4 sm:$0xff]   ;;  %v1919_v8 = vmul.u32.u64.low 3817748708, %v613_v3  ;;  %v1920_v9 = vmul.u32.u64.high 3817748708, %v613_v3, %v1919_v8  ;;  %v643_v14 = vshrl.u32 %v1915_v5, 4 }
  0x34   :  { %532 = vmatprep.mubr.bf16.mxu0 %v1569_v24  ;;  %1494 = vmatmul.mubr.bf16.gmra.mrb[4].mxu1 %v1572_v23  ;;  %v622_v10 = vmul.u32 18, %v621_v6  ;;  %v633_v13 = vmul.u32 18, %v632_v7 }
  0x35   :  { %1497 = vmatprep.mubr.msk.bf16.mxu1 %vm1613_vm0, %v1612_v1  ;;  %1431 = vmatpush3.bf16.msra.mxu0 %v1581_v36  ;;  %v1923_v16 = vmul.u32.u64.low 3817748708, %v614_v12  ;;  %v1924_v17 = vmul.u32.u64.high 3817748708, %v614_v12, %v1923_v16  ;;  %v654_v19 = vshrl.u32 %v1920_v9, 4  ;;  %v644_v21 = vmul.u32 18, %v643_v14 }
  0x36   :  { %v248_v26 = vld [vmem:[#allocation3 + $0x30] sm:$0x11]  ;;  %1506 = vmatpush3.bf16.msra.mxu1 %v1582_v37  ;;  %1432 = vmatprep.subr.bf16.mxu0 %v1583_v38  ;;  %v623_v15 = vsub.s32 %v610_v59, %v622_v10  ;;  %v634_v18 = vsub.s32 %v611_v60, %v633_v13 }
  0x37   :  { %v1303_v27 = vcombine.high %v248_v26, %v248_v26  ;;  %v1302_v29 = vcombine.low %v248_v26, %v248_v26  ;;  %1507 = vmatprep.subr.bf16.mxu1 %v1612_v1  ;;  %v655_v24 = vmul.u32 18, %v654_v19  ;;  %v645_v33 = vsub.s32 %v612_v2, %v644_v21 }
  0x38   :  { %533 = vmatmul.mubr.bf16.gmra.mrb[4].mxu0 %v1571_v25  ;;  %vm670_vm12 = vcmp.ne.s32.totalorder %v623_v15, 0  ;;  %vm675_vm13 = vcmp.lt.s32.totalorder %v623_v15, 0  ;;  %vm671_vm2 = vcmp.ne.s32.totalorder %v634_v18, 0  ;;  %vm676_vm1 = vcmp.lt.s32.totalorder %v634_v18, 0 }
  0x39   :  { %540 = vmatprep.mubr.bf16.mxu0 %v1303_v27  ;;  %1433 = vmatpush3.bf16.msra.mxu0 %v1584_v39  ;;  %v685_v26 = vadd.s32 18, %v623_v15  ;;  %vm1932_vm5 = vmand %vm675_vm13, %vm670_vm12  ;;  %v686_v31 = vadd.s32 18, %v634_v18  ;;  %v665_v37 = vshrl.u32 %v1924_v17, 4  ;;  %v656_v39 = vsub.s32 %v613_v3, %v655_v24 }
  0x3a   :  { %1508 = vmatpush3.bf16.msra.mxu1 %v1585_v40  ;;  %1434 = vmatprep.subr.bf16.mxu0 %v1586_v41  ;;  %vm1936_vm4 = vmand %vm676_vm1, %vm671_vm2  ;;  %vm672_vm8 = vcmp.ne.s32.totalorder %v645_v33, 0  ;;  %vm677_vm9 = vcmp.lt.s32.totalorder %v645_v33, 0 }
  0x3b   :  { %1509 = vmatprep.subr.bf16.mxu1 %v1612_v1  ;;  %v690_v41 = vsel %vm1932_vm5, %v685_v26, %v623_v15  ;;  %vm673_vm12 = vcmp.ne.s32.totalorder %v656_v39, 0  ;;  %vm678_vm13 = vcmp.lt.s32.totalorder %v656_v39, 0  ;;  %vm1948_vm1 = vmand %vm677_vm9, %vm672_vm8  ;;  %v688_v60 = vadd.s32 18, %v656_v39 }
  0x3c   :  { %1498 = vmatmul.mubr.bf16.gmra.mrb[8].mxu1 %v1575_v28  ;;  %vm695_vm10 = vcmp.lt.s32.totalorder %v690_v41, 16  ;;  %vm1953_vm5 = vmand %vm678_vm13, %vm673_vm12 }
  0x3d   :  { %1517 = vmatprep.mubr.msk.bf16.mxu1 %vm1613_vm0, %v1612_v1  ;;  %1435 = vmatpush3.bf16.msra.mxu0 %v1587_v43  ;;  %v693_v14 = vsel %vm1953_vm5, %v688_v60, %v656_v39 }
  0x3e   :  { %1510 = vmatpush3.bf16.msra.mxu1 %v1588_v44  ;;  %1436 = vmatprep.subr.bf16.mxu0 %v1589_v45  ;;  %v691_v44 = vsel %vm1936_vm4, %v686_v31, %v634_v18 }
  0x3f   :  { %1511 = vmatprep.subr.bf16.mxu1 %v1612_v1  ;;  %vm696_vm2 = vcmp.lt.s32.totalorder %v691_v44, 16 }
  0x40   :  { %541 = vmatmul.mubr.bf16.gmra.mrb[8].mxu0 %v1302_v29  ;;  %v1930_v29 = vld [vmem:[%s2038_s2] ss:$0 sm:$0xff] }
  0x41   :  { %1437 = vmatpush3.bf16.msra.mxu0 %v1590_v46 }
  0x42   :  { %1512 = vmatpush3.bf16.msra.mxu1 %v1591_v47  ;;  %1438 = vmatprep.subr.bf16.mxu0 %v1592_v48 }
  0x43   :  { %1513 = vmatprep.subr.bf16.mxu1 %v1612_v1 }
  0x45   :  { %1439 = vmatpush3.bf16.msra.mxu0 %v1593_v49  ;;  %v666_v49 = vmul.u32 18, %v665_v37 }
  0x46   :  { %1514 = vmatpush3.bf16.msra.mxu1 %v1594_v51  ;;  %1440 = vmatprep.subr.bf16.mxu0 %v1595_v52 }
  0x47   :  { %1515 = vmatprep.subr.bf16.mxu1 %v1612_v1  ;;  %v667_v3 = vsub.s32 %v614_v12, %v666_v49 }
  0x49   :  { %1441 = vmatpush3.bf16.msra.mxu0 %v1596_v53  ;;  %vm674_vm4 = vcmp.ne.s32.totalorder %v667_v3, 0  ;;  %vm679_vm8 = vcmp.lt.s32.totalorder %v667_v3, 0  ;;  %v689_v26 = vadd.s32 18, %v667_v3 }
  0x4a   :  { %1516 = vmatpush3.bf16.msra.mxu1 %v1597_v55  ;;  %1442 = vmatprep.subr.bf16.mxu0 %v1598_v56  ;;  %v687_v56 = vadd.s32 18, %v645_v33  ;;  %vm1965_vm12 = vmand %vm679_vm8, %vm674_vm4 }
  0x4c   :  { %v692_v8 = vsel %vm1948_vm1, %v687_v56, %v645_v33 }
  0x4d   :  { %1443 = vmatpush3.bf16.msra.mxu0 %v1599_v57  ;;  %vm697_vm9 = vcmp.lt.s32.totalorder %v692_v8, 16 }
  0xff   :  { %v582_v20 = vpop.f32.mrb[0].mxu1 }
 0x100   :  { %v1491_v22 = vpop.f32.mrb[1].mxu1 }
 0x101   :  { %v585_v23 = vpop.f32.mrb[2].mxu1  ;;  %v779_v22 = vld [vmem:[#allocation2] sm:$0xf] }
 0x102   :  { %v1492_v27 = vpop.f32.mrb[3].mxu1 }
 0x103   :  { %v1399_v25 = vpop.f32.mrb[0].mxu0 }
 0x104   :  { %v1400_v28 = vpop.f32.mrb[1].mxu0 }
 0x105   :  { %v1401_v34 = vadd.f32 %v1400_v28, %v1399_v25  ;;  %v1402_v35 = vpop.f32.mrb[2].mxu0 }
 0x106   :  { %v1403_v38 = vpop.f32.mrb[3].mxu0 }
 0x107   :  { %v527_v40 = vadd.f32 %v1401_v34, %v1930_v29  ;;  %v1404_v43 = vadd.f32 %v1403_v38, %v1402_v35  ;;  %v590_v45 = vpop.f32.mrb[4].mxu1 }
 0x108   :  { %v1495_v48 = vpop.f32.mrb[5].mxu1 }
 0x109   :  { %v583_v46 = vadd.f32 %v582_v20, %v527_v40  ;;  %v530_v47 = vadd.f32 %v1404_v43, %v1930_v29  ;;  %v593_v51 = vpop.f32.mrb[6].mxu1 }
 0x10a   :  { %v1496_v57 = vpop.f32.mrb[7].mxu1 }
 0x10b   :  { %v604_v52 = vmax.f32 %v583_v46, 0.0  ;;  %v586_v53 = vadd.f32 %v585_v23, %v530_v47  ;;  %v1405_v55 = vpop.f32.mrb[4].mxu0  ;;  %v694_v47 = vsel %vm1965_vm12, %v689_v26, %v667_v3 }
 0x10c   :  { %v1406_v58 = vpop.f32.mrb[5].mxu0 }
 0x10d   :  { %v710_v61 = vsel %vm695_vm10, %v604_v52, 0.0  ;;  %v605_v62 = vmax.f32 %v586_v53, 0.0  ;;  %v1407_v63 = vadd.f32 %v1406_v58, %v1405_v55  ;;  %v1408_v0 = vpop.f32.mrb[6].mxu0  ;;  %vm698_vm10 = vcmp.lt.s32.totalorder %v693_v14, 16 }
 0x10e   :  { %v1378_v4 = vpack.c.bf16 %v710_v61, %v710_v61  ;;  %v1409_v5 = vpop.f32.mrb[7].mxu0 }
 0x10f   :  { %v711_v6 = vsel %vm696_vm2, %v605_v62, 0.0  ;;  %v535_v7 = vadd.f32 %v1407_v63, %v1930_v29  ;;  %v1410_v9 = vadd.f32 %v1409_v5, %v1408_v0  ;;  %v598_v15 = vpop.f32.mrb[8].mxu1 }
 0x110   :  { %v732_v10 = vshrl.u32 %v1378_v4, 16  ;;  %v1379_v13 = vpack.c.bf16 %v711_v6, %v711_v6  ;;  %v1499_v12 = vpop.f32.mrb[9].mxu1  ;;  %v735_v19 = vshll.u32 %v1378_v4, 16 }
 0x111   :  { %v591_v16 = vadd.f32 %v590_v45, %v535_v7  ;;  %v538_v17 = vadd.f32 %v1410_v9, %v1930_v29  ;;  %v601_v21 = vpop.f32.mrb[10].mxu1 }
 0x112   :  { %v734_v18 = vrot.slane %v732_v10, 7  ;;  %v740_v20 = vshrl.u32 %v1379_v13, 16  ;;  %v1500_v27 = vpop.f32.mrb[11].mxu1  ;;  %v743_v31 = vshll.u32 %v1379_v13, 16 }
 0x113   :  { %v606_v23 = vmax.f32 %v591_v16, 0.0  ;;  %v594_v24 = vadd.f32 %v593_v51, %v538_v17  ;;  %v1411_v25 = vpop.f32.mrb[8].mxu0 }
 0x114   :  { %v737_v28 = vor.u32 %v735_v19, %v734_v18  ;;  %v742_v30 = vrot.slane %v740_v20, 7  ;;  %v1412_v33 = vpop.f32.mrb[9].mxu0  ;;  %v738_v39 = vrot.slane %v734_v18, 4 }
 0x115   :  { %v712_v35 = vsel %vm697_vm9, %v606_v23, 0.0  ;;  %v607_v36 = vmax.f32 %v594_v24, 0.0  ;;  %v1413_v37 = vadd.f32 %v1412_v33, %v1411_v25  ;;  %v1414_v38 = vpop.f32.mrb[10].mxu0  ;;  %v785_v24 = vld [vmem:[#allocation2 + $0x10] sm:$0x3] }
 0x116   :  { %v780_v40 = vsel %vm1760_vm14, %v737_v28, %v779_v22  ;;  %v745_v41 = vor.u32 %v743_v31, %v742_v30  ;;  %v1380_v43 = vpack.c.bf16 %v712_v35, %v712_v35  ;;  %v1415_v44 = vpop.f32.mrb[11].mxu0  ;;  %vm699_vm14 = vcmp.lt.s32.totalorder %v694_v47, 16 }
 0x117   :  { %781 = vst [vmem:[#allocation2] sm:$0xf] %v780_v40  ;;  %v713_v45 = vsel %vm698_vm10, %v607_v36, 0.0  ;;  %v543_v46 = vadd.f32 %v1413_v37, %v1930_v29  ;;  %v747_v57 = vrot.slane %v742_v30, 4 }
 0x118   :  { %v746_v48 = vsel %vm1766_vm15, %v738_v39, %v745_v41  ;;  %v749_v49 = vshrl.u32 %v1380_v43, 16  ;;  %v1381_v51 = vpack.c.bf16 %v713_v45, %v713_v45  ;;  %v752_v50 = vshll.u32 %v1380_v43, 16 }
 0x119   :  { %782 = vst [vmem:[#allocation2 + $0x4] sm:$0xf] %v746_v48  ;;  %v599_v52 = vadd.f32 %v598_v15, %v543_v46 }
 0x11a   :  { %v751_v53 = vrot.slane %v749_v49, 7  ;;  %v758_v55 = vshrl.u32 %v1381_v51, 16  ;;  %v761_v60 = vshll.u32 %v1381_v51, 16 }
 0x11b   :  { %v608_v56 = vmax.f32 %v599_v52, 0.0 }
 0x11c   :  { %v754_v58 = vor.u32 %v752_v50, %v751_v53  ;;  %v760_v59 = vrot.slane %v758_v55, 7  ;;  %v756_v62 = vrot.slane %v751_v53, 4 }
 0x11d   :  { %v714_v29 = vsel %vm699_vm14, %v608_v56, 0.0 }
 0x11e   :  { %v755_v61 = vsel %vm1766_vm15, %v747_v57, %v754_v58  ;;  %v763_v63 = vor.u32 %v761_v60, %v760_v59  ;;  %v1382_v0 = vpack.c.bf16 %v714_v29, %v714_v29  ;;  %v862_v2 = vld [vmem:[#allocation2] sm:$0xe]  ;;  %v765_v22 = vrot.slane %v760_v59, 4 }
 0x11f   :  { %v788_v3 = vld [vmem:[#allocation2] sm:$0xf]  ;;  %783 = vst [vmem:[#allocation2 + $0x8] sm:$0xf] %v755_v61  ;;  %v1334_v10 = vrot.slane %v862_v2, 9 }
 0x120   :  { %793 = vst [vmem:[#allocation3] sm:$0xf] %v788_v3  ;;  %v798_v4 = vld [vmem:[#allocation2] sm:$0xf]  ;;  %v863_v5 = vld [vmem:[#allocation2 + $0x4] sm:$0xf]  ;;  %v764_v6 = vsel %vm1766_vm15, %v756_v62, %v763_v63 }
 0x121   :  { %v767_v7 = vshrl.u32 %v1382_v0, 16  ;;  %v789_v8 = vld [vmem:[#allocation2 + $0x4] sm:$0xf]  ;;  %v874_v9 = vrot.slane %v863_v5, 5  ;;  %784 = vst [vmem:[#allocation2 + $0xc] sm:$0xf] %v764_v6 }
 0x122   :  { %794 = vst [vmem:[#allocation3 + $0xc] sm:$0xf] %v789_v8  ;;  %v799_v13 = vld [vmem:[#allocation2 + $0x4] sm:$0xf]  ;;  %v804_v14 = vshrl.u32 %v798_v4, 16  ;;  %v807_v15 = vshll.u32 %v798_v4, 16 }
 0x123   :  { %v769_v16 = vrot.slane %v767_v7, 7  ;;  %v770_v17 = vshll.u32 %v1382_v0, 16  ;;  %v813_v12 = vshll.u32 %v799_v13, 16  ;;  %v817_v18 = vshrl.u32 %v799_v13, 16 }
 0x124   :  { %v875_v19 = vsel %vm1797_vm6, %v1334_v10, %v874_v9  ;;  %v806_v20 = vrot.slane %v804_v14, 4  ;;  %v809_v21 = vrot.slane %v807_v15, 5  ;;  %v876_v27 = vrot.slane %v874_v9, 4 }
 0x125   :  { %v772_v23 = vor.u32 %v770_v17, %v769_v16  ;;  %891 = vst [vmem:[#allocation3 + $0x8] sm:$0xf] %v875_v19  ;;  %v815_v25 = vrot.slane %v813_v12, 5  ;;  %v819_v26 = vrot.slane %v817_v18, 4 }
 0x126   :  { %v810_v28 = vor.u32 %v809_v21, %v806_v20  ;;  %v864_v31 = vld [vmem:[#allocation2 + $0x8] sm:$0xf] }
 0x127   :  { %v773_v30 = vsel %vm1766_vm15, %v765_v22, %v772_v23  ;;  %v800_v33 = vld [vmem:[#allocation2 + $0x8] sm:$0xf]  ;;  %v820_v34 = vor.u32 %v819_v26, %v815_v25  ;;  %v877_v37 = vrot.slane %v864_v31, 5  ;;  %v1335_v26 = vld [vmem:[%s2039_s4] ss:$0 sm:$0xff] }
 0x128   :  { %v790_v35 = vld [vmem:[#allocation2 + $0x8] sm:$0xf]  ;;  %v786_v36 = vsel %vm1789_vm7, %v773_v30, %v785_v24  ;;  %v811_v38 = vrot.slane %v810_v28, 4  ;;  %v823_v39 = vshll.u32 %v800_v33, 16  ;;  %v827_v41 = vshrl.u32 %v800_v33, 16 }
 0x129   :  { %795 = vst [vmem:[#allocation3 + $0x18] sm:$0xf] %v790_v35  ;;  %787 = vst [vmem:[#allocation2 + $0x10] sm:$0x3] %v786_v36  ;;  %v821_v40 = vrot.slane %v820_v34, 4  ;;  %v878_v54 = vsel %vm1797_vm6, %v876_v27, %v877_v37  ;;  %v879_v47 = vrot.slane %v877_v37, 4 }
 0x12a   :  { %v865_v43 = vld [vmem:[#allocation2 + $0xc] sm:$0xf]  ;;  %v816_v45 = vsel %vm1803_vm11, %v811_v38, %v815_v25  ;;  %v825_v46 = vrot.slane %v823_v39, 5  ;;  %892 = vst [vmem:[#allocation3 + $0x14] sm:$0xf] %v878_v54  ;;  %v829_v49 = vrot.slane %v827_v41, 4 }
 0x12b   :  { %v791_v44 = vld [vmem:[#allocation2 + $0xc] sm:$0xf]  ;;  %857 = vst [vmem:[#allocation3 + $0x4] sm:$0xf] %v816_v45  ;;  %v880_v48 = vrot.slane %v865_v43, 5  ;;  %v1260_v34 = vld [vmem:[%s2036_s0] sm:$0xff] }
 0x12c   :  { %796 = vst [vmem:[#allocation3 + $0x24] sm:$0xf] %v791_v44  ;;  %v801_v11 = vld [vmem:[#allocation2 + $0xc] sm:$0xf]  ;;  %v826_v53 = vsel %vm1803_vm11, %v821_v40, %v825_v46  ;;  %v830_v55 = vor.u32 %v829_v49, %v825_v46  ;;  %v1601_v10 = vld [vmem:[#allocation3] ss:$12 sps:$4 sm:$0xff]  }
 0x12d   :  { %v833_v51 = vshll.u32 %v801_v11, 16  ;;  %v837_v52 = vshrl.u32 %v801_v11, 16  ;;  %858 = vst [vmem:[#allocation3 + $0x10] sm:$0xf] %v826_v53  ;;  %v881_v50 = vsel %vm1797_vm6, %v879_v47, %v880_v48  ;;  %v882_v58 = vrot.slane %v880_v48, 4  ;;  %v1261_v38 = vld [vmem:[%s2036_s0 + $0x8] sm:$0xff] }
 0x12e   :  { %893 = vst [vmem:[#allocation3 + $0x20] sm:$0xf] %v881_v50  ;;  %v831_v59 = vrot.slane %v830_v55, 4  ;;  %v1369_v45 = vld [vmem:[%s2036_s0 + $0x10] sm:$0xff] }
 0x12f   :  { %v835_v56 = vrot.slane %v833_v51, 5  ;;  %v839_v57 = vrot.slane %v837_v52, 4  ;;  %v1271_v49 = vrot.slane %v1369_v45, 6  ;;  %v1611_v52 = vld [vmem:[%s2036_s0 + $0x18] sm:$0xff] }
 0x130   :  { %v866_v60 = vld [vmem:[#allocation2 + $0x10] sm:$0x3]  ;;  %v1272_v53 = vrot.slane %v1611_v52, 6 }
 0x131   :  { %v802_v29 = vld [vmem:[#allocation2 + $0x10] sm:$0x3]  ;;  %v840_v61 = vor.u32 %v839_v57, %v835_v56  ;;  %v883_v63 = vrot.slane %v866_v60, 5  ;;  %v836_v0 = vsel %vm1803_vm11, %v831_v59, %v835_v56  ;;  %v1600_v4 = vld [vmem:[#allocation3 + $0x8] ss:$12 sps:$4 sm:$0xff]  }
 0x132   :  { %v792_v62 = vld [vmem:[#allocation2 + $0x10] sm:$0x1]  ;;  %v843_v2 = vshll.u32 %v802_v29, 16  ;;  %v847_v3 = vshrl.u32 %v802_v29, 16  ;;  %859 = vst [vmem:[#allocation3 + $0x1c] sm:$0xf] %v836_v0  ;;  %1518 = vmatmul.mubr.bf16.vlgmr.msra.gmra.mrb[12].mxu1 %v1600_v4  ;;  %v1273_v60 = vsel %vm121_vm3, %v1271_v49, %v1272_v53 }
 0x133   :  { %797 = vst [vmem:[#allocation3 + $0x30] sm:$0x1] %v792_v62  ;;  %v841_v5 = vrot.slane %v840_v61, 4  ;;  %v884_v6 = vsel %vm1797_vm6, %v882_v58, %v883_v63  ;;  %v885_v9 = vrot.slane %v883_v63, 4  ;;  %1521 = vmatprep.mubr.msk.bf16.mxu1 %vm1613_vm0, %v1612_v1  ;;  %v1607_v12 = vld [vmem:[#allocation3 + $0x18] ss:$12 sps:$4 sm:$0xff]  }
 0x134   :  { %v845_v7 = vrot.slane %v843_v2, 5  ;;  %v849_v8 = vrot.slane %v847_v3, 4  ;;  %v1603_v13 = vld [vmem:[#allocation3 + $0x4] ss:$12 sps:$4 sm:$0xff]   ;;  %894 = vst [vmem:[#allocation3 + $0x2c] sm:$0xf] %v884_v6 }
 0x135   :  { %895 = vst [vmem:[#allocation3 + $0x38] sm:$0x1] %v885_v9  ;;  %1180 = vmatprep.mubr.bf16.mxu0 %v1603_v13 }
 0x136   :  { %v846_v14 = vsel %vm1803_vm11, %v841_v5, %v845_v7  ;;  %v850_v15 = vor.u32 %v849_v8, %v845_v7  ;;  %1181 = vmatmul.mubr.bf16.vlgmr.msra.gmra.mrb[12].mxu0 %v1601_v10 }
 0x137   :  { %860 = vst [vmem:[#allocation3 + $0x28] sm:$0xf] %v846_v14 }
 0x138   :  { %v851_v32 = vrot.slane %v850_v15, 4 }
 0x13a   :  { %861 = vst [vmem:[#allocation3 + $0x34] sm:$0x1] %v851_v32 }
 0x13b   :  { %v1604_v16 = vld [vmem:[#allocation3 + $0x20] ss:$12 sps:$4 sm:$0xff]  }
 0x13c   :  { %1522 = vmatmul.mubr.bf16.gmra.mrb[16].mxu1 %v1604_v16  ;;  %v1609_v42 = vld [vmem:[#allocation3 + $0x38] ss:$0 sps:$4 sm:$0x11]  }
 0x13d   :  { %1525 = vmatprep.mubr.msk.bf16.mxu1 %vm1613_vm0, %v1612_v1 }
 0x13e   :  { %v1605_v17 = vld [vmem:[#allocation3 + $0x1c] ss:$12 sps:$4 sm:$0xff]  }
 0x13f   :  { %1188 = vmatprep.mubr.bf16.mxu0 %v1605_v17 }
 0x140   :  { %1189 = vmatmul.mubr.bf16.gmra.mrb[16].mxu0 %v1607_v12 }
 0x141   :  { %v904_v18 = vld [vmem:[#allocation3 + $0x30] sm:$0x11] }
 0x142   :  { %v1343_v19 = vcombine.high %v904_v18, %v904_v18  ;;  %v1342_v20 = vcombine.low %v904_v18, %v904_v18 }
 0x144   :  { %1196 = vmatprep.mubr.bf16.mxu0 %v1343_v19  ;;  %1526 = vmatmul.mubr.bf16.gmra.mrb[20].mxu1 %v1609_v42 }
 0x148   :  { %1197 = vmatmul.mubr.bf16.gmra.mrb[20].mxu0 %v1342_v20 }
 0x205   :  { %v1238_v21 = vpop.f32.mrb[12].mxu1 }
 0x206   :  { %v1519_v22 = vpop.f32.mrb[13].mxu1 }
 0x207   :  { %v1241_v23 = vpop.f32.mrb[14].mxu1 }
 0x208   :  { %v1520_v25 = vpop.f32.mrb[15].mxu1 }
 0x209   :  { %v1444_v24 = vpop.f32.mrb[12].mxu0 }
 0x20a   :  { %v1445_v27 = vpop.f32.mrb[13].mxu0 }
 0x20b   :  { %v1446_v1 = vadd.f32 %v1445_v27, %v1444_v24  ;;  %v1447_v28 = vpop.f32.mrb[14].mxu0 }
 0x20c   :  { %v1448_v30 = vpop.f32.mrb[15].mxu0 }
 0x20d   :  { %v1183_v31 = vadd.f32 %v1446_v1, %v1335_v26  ;;  %v1449_v33 = vadd.f32 %v1448_v30, %v1447_v28 }
 0x20f   :  { %v1239_v35 = vadd.f32 %v1238_v21, %v1183_v31  ;;  %v1186_v36 = vadd.f32 %v1449_v33, %v1335_v26  ;;  %v1246_v37 = vpop.f32.mrb[16].mxu1 }
 0x210   :  { %v1523_v39 = vpop.f32.mrb[17].mxu1 }
 0x211   :  { %v1262_v40 = vadd.f32 %v1260_v34, %v1239_v35  ;;  %v1242_v41 = vadd.f32 %v1241_v23, %v1186_v36  ;;  %v1249_v43 = vpop.f32.mrb[18].mxu1 }
 0x212   :  { %v1524_v54 = vpop.f32.mrb[19].mxu1 }
 0x213   :  { %v1450_v44 = vpop.f32.mrb[16].mxu0  ;;  %1264 = vst [vmem:[%s2040_s5] sm:$0xff] %v1262_v40  ;;  %v1263_v46 = vadd.f32 %v1261_v38, %v1242_v41 }
 0x214   :  { %v1451_v47 = vpop.f32.mrb[17].mxu0 }
 0x215   :  { %v1452_v11 = vadd.f32 %v1451_v47, %v1450_v44  ;;  %v1453_v48 = vpop.f32.mrb[18].mxu0  ;;  %1265 = vst [vmem:[%s2040_s5 + $0x8] sm:$0xff] %v1263_v46 }
 0x216   :  { %v1454_v51 = vpop.f32.mrb[19].mxu0 }
 0x217   :  { %v1191_v50 = vadd.f32 %v1452_v11, %v1335_v26  ;;  %v1455_v55 = vadd.f32 %v1454_v51, %v1453_v48  ;;  %v1254_v56 = vpop.f32.mrb[20].mxu1 }
 0x218   :  { %v1527_v59 = vpop.f32.mrb[21].mxu1 }
 0x219   :  { %v1247_v57 = vadd.f32 %v1246_v37, %v1191_v50  ;;  %v1194_v58 = vadd.f32 %v1455_v55, %v1335_v26  ;;  %v1257_v29 = vpop.f32.mrb[22].mxu1 }
 0x21a   :  { %v1528_v0 = vpop.f32.mrb[23].mxu1 }
 0x21b   :  { %v1277_v61 = vadd.f32 %v1271_v49, %v1247_v57  ;;  %v1250_v62 = vadd.f32 %v1249_v43, %v1194_v58  ;;  %v1456_v63 = vpop.f32.mrb[20].mxu0 }
 0x21c   :  { %v1457_v2 = vpop.f32.mrb[21].mxu0 }
 0x21d   :  { %1371 = vst [vmem:[%s2040_s5 + $0xe] sm:$0xfc] %v1277_v61  ;;  %v1278_v3 = vadd.f32 %v1273_v60, %v1250_v62  ;;  %v1458_v4 = vadd.f32 %v1457_v2, %v1456_v63  ;;  %v1459_v5 = vpop.f32.mrb[22].mxu0 }
 0x21e   :  { %v1460_v6 = vpop.f32.mrb[23].mxu0 }
 0x21f   :  { %1372 = vst [vmem:[%s2040_s5 + $0x16] sm:$0xff] %v1278_v3  ;;  %v1199_v7 = vadd.f32 %v1458_v4, %v1335_v26 }
 0x221   :  { %v1255_v8 = vadd.f32 %v1254_v56, %v1199_v7 }
 0x223   :  { %v1279_v9 = vadd.f32 %v1272_v53, %v1255_v8 }
 0x225   :  { %1373 = vst [vmem:[%s2040_s5 + $0x1e] sm:$0x3] %v1279_v9 }

</bundles_post_ra>
